<compile_context>
chip_gen: v5e
topology: v5e:2x2
jax: 0.10.0
libtpu: 0.0.40
codegen_flags: <defaults>
</compile_context>

<pallas_src>
import jax
import jax.numpy as jnp
from jax.experimental import pallas as pl
from jax.experimental.pallas import tpu as pltpu


def itm_prediction_kernel(
    x_ref,      # (TILE_N, H)  input activations (input dtype)
    w1_ref,     # (H, H)       first Linear weight (in x out)
    b1_ref,     # (1, H)       first Linear bias
    gamma_ref,  # (1, H)       LayerNorm weight
    beta_ref,   # (1, H)       LayerNorm bias
    w2_ref,     # (1, H)       second Linear weight, presented as a lane row
    b2_ref,     # (1, 1)       second Linear bias
    o_ref,      # (TILE_N, 1)  output logits (f32)
):
    # ---- Linear(H, H) on the MXU, f32 accumulation ---------------------------
    h = jnp.dot(x_ref[...], w1_ref[...], preferred_element_type=jnp.float32)
    h = h + b1_ref[...].astype(jnp.float32)

    # ---- ReLU -----------------------------------------------------------------
    h = jnp.maximum(h, 0.0)

    # ---- fused BertLayerNorm(eps=1e-12) + Linear(H, 1) ------------------------
    # logit = inv * (sum_h h*gw - mu * sum_h gw) + sum_h beta*w2 + b2
    inv_h = 1.0 / h.shape[-1]
    gamma = gamma_ref[...].astype(jnp.float32)            # (1, H)
    beta = beta_ref[...].astype(jnp.float32)              # (1, H)
    w2 = w2_ref[...].astype(jnp.float32)                  # (1, H)
    gw = gamma * w2                                        # (1, H)

    s1 = jnp.sum(h, axis=-1, keepdims=True)                # (TILE_N, 1)
    s2 = jnp.sum(h * h, axis=-1, keepdims=True)            # (TILE_N, 1)
    sw = jnp.sum(h * gw, axis=-1, keepdims=True)           # (TILE_N, 1)

    mu = s1 * inv_h
    var = jnp.maximum(s2 * inv_h - mu * mu, 0.0)            # one-pass variance
    inv = jax.lax.rsqrt(var + 1e-12)                        # EUP slot, ~free

    s_gw = jnp.sum(gw, axis=-1, keepdims=True)               # (1, 1)
    s_bw = jnp.sum(beta * w2, axis=-1, keepdims=True)        # (1, 1)
    bias = s_bw + b2_ref[...].astype(jnp.float32)            # (1, 1)

    logit = inv * (sw - mu * s_gw) + bias                     # (TILE_N, 1)
    o_ref[...] = logit.astype(o_ref.dtype)


def _round_up(x, m):
    return ((x + m - 1) // m) * m


def _vmem_limit_bytes(in_dtype, tile_n, hidden, param_bytes):
    """Honest VMEM budget: double-buffered IO + resident params + f32 scratch."""
    itemsize = jnp.dtype(in_dtype).itemsize
    io = 2 * tile_n * hidden * itemsize + 2 * tile_n * 4   # x tiles (x2) + (tile_n,1) f32 out (x2)
    weights = 2 * param_bytes                              # resident params (double-buffered by default)
    scratch = 3 * tile_n * hidden * 4                      # f32 h + elementwise temporaries
    need = int(1.2 * (io + weights + scratch)) + (4 << 20) # headroom for compiler internals
    try:
        cap = int(0.85 * pltpu.get_tpu_info().vmem_capacity_bytes)
    except Exception:
        cap = int(0.85 * (64 << 20))                       # assume smallest part (v7x per-TC)
    return int(max(32 << 20, min(need, cap)))


def itm_prediction(x, params, tile_n=1024, matmul_dtype=None):
    """x: (..., H) -> logits (..., 1). Fused Linear+ReLU+LN+Linear head."""
    w1, b1, gamma, beta, w2, b2 = (
        params["w1"], params["b1"], params["gamma"],
        params["beta"], params["w2"], params["b2"],
    )
    H = w1.shape[0]
    assert w2.reshape(-1).shape[0] == H, "ItmPrediction head is Linear(hidden_size, 1)"
    lead = x.shape[:-1]
    x2 = x.reshape(-1, H)
    N = x2.shape[0]

    # Optional bf16 MXU operands (recommended on v5e); stats stay f32 in-kernel.
    if matmul_dtype is not None:
        x2 = x2.astype(matmul_dtype)
        w1 = w1.astype(matmul_dtype)

    # Layout plumbing only: present params as lane rows.
    w1m = w1
    b1r = b1.reshape(1, H)
    gammar = gamma.reshape(1, H)
    betar = beta.reshape(1, H)
    w2r = w2.reshape(1, H)
    b2r = b2.reshape(1, 1)

    # ---- row tiling -----------------------------------------------------------
    sub = 16 if x2.dtype == jnp.bfloat16 else 8
    itemsize = jnp.dtype(x2.dtype).itemsize
    tile_n = _round_up(max(int(tile_n), sub), sub)
    tile_n = min(tile_n, _round_up(N, sub))
    # Keep (double-buffered x tile + f32 intermediates) under ~24 MiB so the
    # kernel also fits v7x's 64 MiB VMEM alongside the resident weights.
    while tile_n > sub and (2 * tile_n * H * itemsize + 3 * tile_n * H * 4) > (24 << 20):
        tile_n //= 2
    tile_n = max(sub, _round_up(tile_n, sub))

    Np = _round_up(N, tile_n)
    if Np != N:
        x2 = jnp.concatenate([x2, jnp.zeros((Np - N, H), x2.dtype)], axis=0)

    grid = (pl.cdiv(Np, tile_n),)

    param_bytes = sum(int(a.size) * jnp.dtype(a.dtype).itemsize
                      for a in (w1m, b1r, gammar, betar, w2r, b2r))
    vmem_limit = _vmem_limit_bytes(x2.dtype, tile_n, H, param_bytes)

    # NOTE: for very large H (>= ~2048 in f32) the (H, H) weight should also be
    # K-tiled with an f32 accumulator in scratch; not needed at BERT-scale H.

    out = pl.pallas_call(
        itm_prediction_kernel,
        out_shape=jax.ShapeDtypeStruct((Np, 1), jnp.float32),
        grid=grid,
        in_specs=[
            pl.BlockSpec((tile_n, H), lambda i: (i, 0)),   # x: tiled over rows
            pl.BlockSpec((H, H), lambda i: (0, 0)),        # w1: resident in VMEM
            pl.BlockSpec((1, H), lambda i: (0, 0)),        # b1
            pl.BlockSpec((1, H), lambda i: (0, 0)),        # gamma
            pl.BlockSpec((1, H), lambda i: (0, 0)),        # beta
            pl.BlockSpec((1, H), lambda i: (0, 0)),        # w2 row
            pl.BlockSpec((1, 1), lambda i: (0, 0)),        # b2
        ],
        out_specs=pl.BlockSpec((tile_n, 1), lambda i: (i, 0)),
        compiler_params=pltpu.CompilerParams(
            dimension_semantics=("parallel",),             # rows independent -> v7x 2-TC sharding
            vmem_limit_bytes=vmem_limit,
        ),
    )(x2, w1m, b1r, gammar, betar, w2r, b2r)

    return out[:N].reshape(*lead, 1)


def init_params(key, hidden_size, dtype=jnp.float32):
    """Deterministic synthetic parameters matching the module's shapes (L=1)."""
    k1, k2, k3, k4, k5, k6 = jax.random.split(key, 6)
    # nn.Linear stores (out, in); we keep (in, out) so the kernel does x @ W.
    w1 = jax.random.normal(k1, (hidden_size, hidden_size), jnp.float32) * 0.02
    b1 = jax.random.normal(k2, (1, hidden_size), jnp.float32) * 0.02
    gamma = jnp.ones((1, hidden_size), jnp.float32) \
        + jax.random.normal(k3, (1, hidden_size), jnp.float32) * 0.01
    beta = jax.random.normal(k4, (1, hidden_size), jnp.float32) * 0.01
    w2 = jax.random.normal(k5, (hidden_size, 1), jnp.float32) * 0.02
    b2 = jax.random.normal(k6, (1, 1), jnp.float32) * 0.02
    p = dict(w1=w1, b1=b1, gamma=gamma, beta=beta, w2=w2, b2=b2)
    return {k: v.astype(dtype) for k, v in p.items()}


def _reference(x, params):
    """Pure-JAX f32 reference for sanity checking."""
    f32 = lambda a: a.astype(jnp.float32)
    h = jnp.dot(f32(x), f32(params["w1"]), precision=jax.lax.Precision.HIGHEST)
    h = h + f32(params["b1"]).reshape(-1)
    h = jnp.maximum(h, 0.0)
    mu = jnp.mean(h, axis=-1, keepdims=True)
    var = jnp.mean((h - mu) ** 2, axis=-1, keepdims=True)
    ln = (h - mu) / jnp.sqrt(var + 1e-12) * f32(params["gamma"]).reshape(-1) \
        + f32(params["beta"]).reshape(-1)
    return jnp.dot(ln, f32(params["w2"]), precision=jax.lax.Precision.HIGHEST) \
        + f32(params["b2"]).reshape(-1)


if __name__ == "__main__":
    key = jax.random.PRNGKey(0)
    k_x1, k_p1, k_x2, k_p2 = jax.random.split(key, 4)

    # --- Test 1: small f32, single tile (module-scale sanity) -----------------
    batch, seq, hidden = 2, 8, 32
    x = jax.random.normal(k_x1, (batch, seq, hidden), jnp.float32)
    params = init_params(k_p1, hidden, jnp.float32)
    out = jax.block_until_ready(itm_prediction(x, params))
    ref = _reference(x, params)
    assert out.shape == (batch, seq, 1), f"bad shape {out.shape}"
    assert jnp.allclose(out, ref, atol=1e-4, rtol=1e-4), "f32 mismatch vs reference"

    # --- Test 2: bf16, H=768, ragged N > tile_n (multi-tile + row padding) ----
    batch2, seq2, hidden2 = 4, 500, 768
    x2 = jax.random.normal(k_x2, (batch2, seq2, hidden2), jnp.float32).astype(jnp.bfloat16)
    params2 = init_params(k_p2, hidden2, jnp.bfloat16)
    out2 = jax.block_until_ready(itm_prediction(x2, params2))
    ref2 = _reference(x2, params2)
    assert out2.shape == (batch2, seq2, 1), f"bad shape {out2.shape}"
    assert jnp.allclose(out2, ref2, atol=3e-2, rtol=3e-2), "bf16 mismatch vs reference"

    print("KERNEL_OK")
</pallas_src>

<mosaic_0001>
module attributes {stable_mosaic.version = 11 : i64} {
  func.func @itm_prediction_kernel(%arg0: i32, %arg1: memref<16x32xf32, #tpu.memory_space<vmem>>, %arg2: memref<32x32xf32, #tpu.memory_space<vmem>>, %arg3: memref<1x32xf32, #tpu.memory_space<vmem>>, %arg4: memref<1x32xf32, #tpu.memory_space<vmem>>, %arg5: memref<1x32xf32, #tpu.memory_space<vmem>>, %arg6: memref<1x32xf32, #tpu.memory_space<vmem>>, %arg7: memref<1x1xf32, #tpu.memory_space<vmem>>, %arg8: memref<16x1xf32, #tpu.memory_space<vmem>>) attributes {dimension_semantics = [#tpu.dimension_semantics<parallel>], iteration_bounds = array<i64: 1>, scalar_prefetch = 0 : i64, scratch_operands = 0 : i64, tpu.core_type = #tpu.core_type<tc>, window_params = [{transform_indices = @transform_0, window_bounds = array<i64: 16, 32>}, {pipeline_mode = #tpu.pipeline_mode<synchronous>, transform_indices = @transform_1, window_bounds = array<i64: 32, 32>}, {pipeline_mode = #tpu.pipeline_mode<synchronous>, transform_indices = @transform_2, window_bounds = array<i64: 1, 32>}, {pipeline_mode = #tpu.pipeline_mode<synchronous>, transform_indices = @transform_3, window_bounds = array<i64: 1, 32>}, {pipeline_mode = #tpu.pipeline_mode<synchronous>, transform_indices = @transform_4, window_bounds = array<i64: 1, 32>}, {pipeline_mode = #tpu.pipeline_mode<synchronous>, transform_indices = @transform_5, window_bounds = array<i64: 1, 32>}, {pipeline_mode = #tpu.pipeline_mode<synchronous>, transform_indices = @transform_6, window_bounds = array<i64: 1, 1>}, {transform_indices = @transform_7, window_bounds = array<i64: 16, 1>}]} {
    %c0 = arith.constant 0 : index
    %c0_0 = arith.constant 0 : index
    %0 = vector.load %arg1[%c0, %c0_0] : memref<16x32xf32, #tpu.memory_space<vmem>>, vector<16x32xf32>
    %c0_1 = arith.constant 0 : index
    %c0_2 = arith.constant 0 : index
    %1 = vector.load %arg2[%c0_1, %c0_2] : memref<32x32xf32, #tpu.memory_space<vmem>>, vector<32x32xf32>
    %cst = arith.constant dense<0.000000e+00> : vector<16x32xf32>
    %2 = tpu.matmul %0, %1, %cst {dimension_numbers = #tpu.dot_dimension_numbers<[1], [0], [0], [1], [0, 0, 1, 1], [], []>} : vector<16x32xf32>, vector<32x32xf32>, vector<16x32xf32> -> vector<16x32xf32>
    %c0_3 = arith.constant 0 : index
    %c0_4 = arith.constant 0 : index
    %3 = vector.load %arg3[%c0_3, %c0_4] : memref<1x32xf32, #tpu.memory_space<vmem>>, vector<1x32xf32>
    %4 = vector.broadcast %3 : vector<1x32xf32> to vector<16x32xf32>
    %5 = arith.addf %2, %4 : vector<16x32xf32>
    %cst_5 = arith.constant 0.000000e+00 : f32
    %6 = vector.broadcast %cst_5 : f32 to vector<16x32xf32>
    %7 = arith.maximumf %5, %6 : vector<16x32xf32>
    %c0_6 = arith.constant 0 : index
    %c0_7 = arith.constant 0 : index
    %8 = vector.load %arg4[%c0_6, %c0_7] : memref<1x32xf32, #tpu.memory_space<vmem>>, vector<1x32xf32>
    %c0_8 = arith.constant 0 : index
    %c0_9 = arith.constant 0 : index
    %9 = vector.load %arg5[%c0_8, %c0_9] : memref<1x32xf32, #tpu.memory_space<vmem>>, vector<1x32xf32>
    %c0_10 = arith.constant 0 : index
    %c0_11 = arith.constant 0 : index
    %10 = vector.load %arg6[%c0_10, %c0_11] : memref<1x32xf32, #tpu.memory_space<vmem>>, vector<1x32xf32>
    %11 = arith.mulf %8, %10 : vector<1x32xf32>
    %cst_12 = arith.constant dense<0.000000e+00> : vector<16xf32>
    %12 = vector.multi_reduction <add>, %7, %cst_12 [1] : vector<16x32xf32> to vector<16xf32>
    %13 = vector.shape_cast %12 : vector<16xf32> to vector<16x1xf32>
    %14 = arith.mulf %7, %7 : vector<16x32xf32>
    %cst_13 = arith.constant dense<0.000000e+00> : vector<16xf32>
    %15 = vector.multi_reduction <add>, %14, %cst_13 [1] : vector<16x32xf32> to vector<16xf32>
    %16 = vector.shape_cast %15 : vector<16xf32> to vector<16x1xf32>
    %17 = vector.broadcast %11 : vector<1x32xf32> to vector<16x32xf32>
    %18 = arith.mulf %7, %17 : vector<16x32xf32>
    %cst_14 = arith.constant dense<0.000000e+00> : vector<16xf32>
    %19 = vector.multi_reduction <add>, %18, %cst_14 [1] : vector<16x32xf32> to vector<16xf32>
    %20 = vector.shape_cast %19 : vector<16xf32> to vector<16x1xf32>
    %cst_15 = arith.constant 3.125000e-02 : f32
    %21 = vector.broadcast %cst_15 : f32 to vector<16x1xf32>
    %22 = arith.mulf %13, %21 : vector<16x1xf32>
    %cst_16 = arith.constant 3.125000e-02 : f32
    %23 = vector.broadcast %cst_16 : f32 to vector<16x1xf32>
    %24 = arith.mulf %16, %23 : vector<16x1xf32>
    %25 = arith.mulf %22, %22 : vector<16x1xf32>
    %26 = arith.subf %24, %25 : vector<16x1xf32>
    %cst_17 = arith.constant 0.000000e+00 : f32
    %27 = vector.broadcast %cst_17 : f32 to vector<16x1xf32>
    %28 = arith.maximumf %26, %27 : vector<16x1xf32>
    %cst_18 = arith.constant 9.99999996E-13 : f32
    %29 = vector.broadcast %cst_18 : f32 to vector<16x1xf32>
    %30 = arith.addf %28, %29 : vector<16x1xf32>
    %31 = math.rsqrt %30 : vector<16x1xf32>
    %cst_19 = arith.constant dense<0.000000e+00> : vector<1xf32>
    %32 = vector.multi_reduction <add>, %11, %cst_19 [1] : vector<1x32xf32> to vector<1xf32>
    %33 = vector.shape_cast %32 : vector<1xf32> to vector<1x1xf32>
    %34 = arith.mulf %9, %10 : vector<1x32xf32>
    %cst_20 = arith.constant dense<0.000000e+00> : vector<1xf32>
    %35 = vector.multi_reduction <add>, %34, %cst_20 [1] : vector<1x32xf32> to vector<1xf32>
    %36 = vector.shape_cast %35 : vector<1xf32> to vector<1x1xf32>
    %c0_21 = arith.constant 0 : index
    %c0_22 = arith.constant 0 : index
    %37 = vector.load %arg7[%c0_21, %c0_22] : memref<1x1xf32, #tpu.memory_space<vmem>>, vector<1x1xf32>
    %38 = arith.addf %36, %37 : vector<1x1xf32>
    %39 = vector.broadcast %33 : vector<1x1xf32> to vector<16x1xf32>
    %40 = arith.mulf %22, %39 : vector<16x1xf32>
    %41 = arith.subf %20, %40 : vector<16x1xf32>
    %42 = arith.mulf %31, %41 : vector<16x1xf32>
    %43 = vector.broadcast %38 : vector<1x1xf32> to vector<16x1xf32>
    %44 = arith.addf %42, %43 : vector<16x1xf32>
    %c0_23 = arith.constant 0 : index
    %c0_24 = arith.constant 0 : index
    %45 = vector.load %arg8[%c0_23, %c0_24] : memref<16x1xf32, #tpu.memory_space<vmem>>, vector<16x1xf32>
    tpu.vector_store %arg8[%c0_23, %c0_24], %44 {strides = array<i32>} : memref<16x1xf32, #tpu.memory_space<vmem>>, vector<16x1xf32>,
    return
  }
  func.func @transform_0(%arg0: i32) -> (i32, i32) {
    %c0_i32 = arith.constant 0 : i32
    %c0_i32_0 = arith.constant 0 : i32
    return %arg0, %c0_i32 : i32, i32
  }
  func.func @transform_1(%arg0: i32) -> (i32, i32) {
    %c0_i32 = arith.constant 0 : i32
    %c0_i32_0 = arith.constant 0 : i32
    %c0_i32_1 = arith.constant 0 : i32
    return %c0_i32, %c0_i32_0 : i32, i32
  }
  func.func @transform_2(%arg0: i32) -> (i32, i32) {
    %c0_i32 = arith.constant 0 : i32
    %c0_i32_0 = arith.constant 0 : i32
    %c0_i32_1 = arith.constant 0 : i32
    return %c0_i32, %c0_i32_0 : i32, i32
  }
  func.func @transform_3(%arg0: i32) -> (i32, i32) {
    %c0_i32 = arith.constant 0 : i32
    %c0_i32_0 = arith.constant 0 : i32
    %c0_i32_1 = arith.constant 0 : i32
    return %c0_i32, %c0_i32_0 : i32, i32
  }
  func.func @transform_4(%arg0: i32) -> (i32, i32) {
    %c0_i32 = arith.constant 0 : i32
    %c0_i32_0 = arith.constant 0 : i32
    %c0_i32_1 = arith.constant 0 : i32
    return %c0_i32, %c0_i32_0 : i32, i32
  }
  func.func @transform_5(%arg0: i32) -> (i32, i32) {
    %c0_i32 = arith.constant 0 : i32
    %c0_i32_0 = arith.constant 0 : i32
    %c0_i32_1 = arith.constant 0 : i32
    return %c0_i32, %c0_i32_0 : i32, i32
  }
  func.func @transform_6(%arg0: i32) -> (i32, i32) {
    %c0_i32 = arith.constant 0 : i32
    %c0_i32_0 = arith.constant 0 : i32
    %c0_i32_1 = arith.constant 0 : i32
    return %c0_i32, %c0_i32_0 : i32, i32
  }
  func.func @transform_7(%arg0: i32) -> (i32, i32) {
    %c0_i32 = arith.constant 0 : i32
    %c0_i32_0 = arith.constant 0 : i32
    return %arg0, %c0_i32 : i32, i32
  }
}

</mosaic_0001>

<bundles_post_ra>
// kernel: tpu_custom_call.1
= control target key start
LH: loop header
LB: loop body
LE: loop exit
PB: predicated region body
PF: predicated region fallthrough
CT: control target
= control target key end

     0   :  { %s340_s0 = inlined_call_operand.hbm [shape: f32[16,32], index: 0, kind: input, shape index: {}]   ;;  %s341_s1 = inlined_call_operand.hbm [shape: f32[32,32], index: 1, kind: input, shape index: {}]   ;;  %s342_s2 = inlined_call_operand.vmem [shape: f32[1,32], index: 2, kind: input, shape index: {}]   ;;  %s343_s3 = inlined_call_operand.vmem [shape: f32[1,32], index: 3, kind: input, shape index: {}]   ;;  %s344_s4 = inlined_call_operand.vmem [shape: f32[1,32], index: 4, kind: input, shape index: {}]   ;;  %s345_s5 = inlined_call_operand.vmem [shape: f32[1,32], index: 5, kind: input, shape index: {}]   ;;  %s346_s6 = inlined_call_operand.<no memory space> [shape: f32[1,1], index: 6, kind: input, shape index: {}]   ;;  %s347_s7 = inlined_call_operand.vmem [shape: f32[16,1], index: 7, kind: output, shape index: {}]  }
   0x1   :  { %v12_v0 = vstv %s346_s6 }
   0x2   :  { %13 = vst [vmem:[#allocation2] sm:$0x1] %v12_v0 }
   0x3   :  { %14 = vsyncpa [#allocation4], 0  ;;  %s20_s28 = sshll.u32 %s340_s0, 4  ;;  %s21_s28 = int_to_ptr.hbm [resolvable:$true] %s20_s28 }
   0x4   :  { %15 = vsyncpa [#allocation6], 0  ;;  %s259_s29 = smov [#allocation3]   ;;  %s33_s10 = sshll.u32 %s341_s1, 4  ;;  %s34_s10 = int_to_ptr.hbm [resolvable:$true] %s33_s10 }
   0x5   :  { %s22_s30 = sshll.u32 %s259_s29, 4  ;;  %s260_s11 = smov 128   ;;  %s23_s30 = int_to_ptr.vmem [resolvable:$true] %s22_s30 }
   0x6   :  { %s261_s12 = smov 8   ;;  %s262_s6 = smov [#allocation5]  }
   0x7   :  { %28 = dma.hbm_to_vmem [thread:$0]  %s21_s28, 256, %s23_s30, [#allocation4], %s260_s11, %s260_s11, %s261_s12  }
   0x8   :  { %s35_s13 = sshll.u32 %s262_s6, 4  ;;  %s36_s13 = int_to_ptr.vmem [resolvable:$true] %s35_s13 }
   0x9   :  { %41 = dma.hbm_to_vmem [thread:$0]  %s34_s10, 512, %s36_s13, [#allocation6], %s260_s11, %s260_s11, %s261_s12  }
   0xa   :  { %255 = dma.done.wait [#allocation4], 256  }
   0xb   :  { %256 = vsyncadd [#allocation4], 4294967040 }
   0xc   :  { %257 = dma.done.wait [#allocation6], 512  }
   0xd   :  { %258 = vsyncadd [#allocation6], 4294966784  ;;  %v65_v1 = vld [vmem:[#allocation5 + $0x18] sm:$0xff]  ;;  %v64_v2 = vld [vmem:[#allocation5 + $0x10] sm:$0xff]  ;;  %vm163_vm0 = vcmask 253952   ;;  %vm70_vm1 = vcmask 261120  }
   0xe   :  { %89 = vmatpush.msra.mxu0 %v65_v1  ;;  %v63_v3 = vld [vmem:[#allocation5 + $0x8] sm:$0xff]  ;;  %194 = vmatpush.msra.mxu1 %v65_v1  ;;  %v62_v7 = vld [vmem:[#allocation5] sm:$0xff]  ;;  %v60_v8 = vld [vmem:[#allocation3] sm:$0xff]  ;;  %vm183_vm5 = vcmask 7168  }
   0xf   :  { %v102_v4 = vld [vmem:[%s343_s3] sm:$0x1]  ;;  %v61_v9 = vld [vmem:[#allocation3 + $0x8] sm:$0xff] }
  0x10   :  { %v104_v5 = vld [vmem:[%s345_s5] sm:$0x1]  ;;  %90 = vmatpush.msra.mxu0 %v64_v2  ;;  %195 = vmatpush.msra.mxu1 %v64_v2 }
  0x11   :  { %v105_v6 = vmul.f32 %v104_v5, %v102_v4  ;;  %v202_v11 = vld [vmem:[%s342_s2] ss:$0 sm:$0xff] }
  0x12   :  { %91 = vmatpush.msra.mxu0 %v63_v3  ;;  %196 = vmatpush.msra.mxu1 %v63_v3  ;;  %v103_v27 = vld [vmem:[%s344_s4] sm:$0x1] }
  0x13   :  { %v164_v10 = vsel %vm163_vm0, %v105_v6, 0.0  ;;  %v121_v14 = vperm.slane %v105_v6, 0  ;;  %v167_v29 = vmul.f32 %v104_v5, %v103_v27  ;;  %v171_v53 = vld [vmem:[#allocation2] sm:$0x1] }
  0x14   :  { %165 = vadd.xlane.f32.xlu2 %v164_v10  ;;  %92 = vmatpush.msra.mxu0 %v62_v7 }
  0x15   :  { %197 = vmatpush.msra.mxu1 %v62_v7  ;;  %192 = vmatmul.msk.f32.vlgmr.msra.gmra.mxu0 %vm70_vm1, %v60_v8  ;;  %v168_v31 = vsel %vm163_vm0, %v167_v29, 0.0 }
  0x16   :  { %193 = vmatmul.msk.f32.vlgmr.msra.gmra.mxu1 %vm70_vm1, %v61_v9 }
  0x87   :  { %v166_v47 = vpop.xlane.xlu2 %165 }
  0x88   :  { %v173_v51 = vperm.slane %v166_v47, 0 }
  0x92   :  { %v94_v12 = vpop.f32.mrf.mxu0 }
  0x93   :  { %v97_v13 = vpop.f32.mrf.mxu1  ;;  %v95_v15 = vadd.f32 %v202_v11, %v94_v12 }
  0x94   :  { %v98_v16 = vadd.f32 %v202_v11, %v97_v13 }
  0x95   :  { %v100_v17 = vmax.f32 %v95_v15, 0.0 }
  0x96   :  { %v101_v19 = vmax.f32 %v98_v16, 0.0 }
  0x97   :  { %v106_v18 = vsel %vm70_vm1, %v100_v17, 0.0  ;;  %v123_v20 = vmul.f32 %v121_v14, %v100_v17  ;;  %v112_v21 = vmul.f32 %v100_v17, %v100_v17 }
  0x98   :  { %107 = vadd.xlane.f32.xlu0 %v106_v18  ;;  %v113_v24 = vmul.f32 %v101_v19, %v101_v19  ;;  %v109_v25 = vsel %vm70_vm1, %v101_v19, 0.0  ;;  %v124_v28 = vmul.f32 %v121_v14, %v101_v19 }
  0x99   :  { %v125_v22 = vsel %vm70_vm1, %v123_v20, 0.0  ;;  %v114_v23 = vsel %vm70_vm1, %v112_v21, 0.0 }
  0x9a   :  { %126 = vadd.xlane.f32.xlu2 %v125_v22  ;;  %115 = vadd.xlane.f32.xlu1 %v114_v23  ;;  %v117_v26 = vsel %vm70_vm1, %v113_v24, 0.0  ;;  %v128_v30 = vsel %vm70_vm1, %v124_v28, 0.0 }
  0xa0   :  { %110 = vadd.xlane.f32.xlu0 %v109_v25 }
  0xa2   :  { %118 = vadd.xlane.f32.xlu1 %v117_v26 }
  0xa8   :  { %129 = vadd.xlane.f32.xlu0 %v128_v30 }
  0xaa   :  { %169 = vadd.xlane.f32.xlu1 %v168_v31 }
 0x10b   :  { %v108_v32 = vpop.xlane.xlu0 %107 }
 0x10c   :  { %v131_v33 = vmul.f32 0.03125, %v108_v32 }
 0x10d   :  { %v116_v34 = vpop.xlane.xlu1 %115  ;;  %v127_v60 = vpop.xlane.xlu2 %126 }
 0x10e   :  { %v135_v35 = vmul.f32 %v131_v33, %v131_v33  ;;  %v133_v36 = vmul.f32 0.03125, %v116_v34  ;;  %v174_v56 = vmul.f32 %v173_v51, %v131_v33 }
 0x110   :  { %v137_v37 = vsub.f32 %v133_v36, %v135_v35  ;;  %v176_v63 = vsub.f32 %v127_v60, %v174_v56 }
 0x112   :  { %v139_v38 = vmax.f32 %v137_v37, 0.0 }
 0x113   :  { %v111_v39 = vpop.xlane.xlu0 %110 }
 0x114   :  { %v141_v40 = vadd.f32 1e-12, %v139_v38  ;;  %v132_v41 = vmul.f32 0.03125, %v111_v39 }
 0x115   :  { %v119_v42 = vpop.xlane.xlu1 %118 }
 0x116   :  { %203 = vrsqrt.f32 %v141_v40  ;;  %v136_v43 = vmul.f32 %v132_v41, %v132_v41  ;;  %v134_v44 = vmul.f32 0.03125, %v119_v42  ;;  %vm149_vm3 = vweird.f32 %v141_v40 }
 0x117   :  { %v175_v8 = vmul.f32 %v173_v51, %v132_v41 }
 0x118   :  { %v138_v45 = vsub.f32 %v134_v44, %v136_v43 }
 0x11a   :  { %v140_v46 = vmax.f32 %v138_v45, 0.0 }
 0x11b   :  { %v130_v7 = vpop.xlane.xlu0 %129 }
 0x11c   :  { %v204_v48 = vpop.eup %203  ;;  %v142_v49 = vadd.f32 1e-12, %v140_v46  ;;  %v177_v10 = vsub.f32 %v130_v7, %v175_v8 }
 0x11d   :  { %v144_v50 = vmul.f32 %v204_v48, %v141_v40  ;;  %v170_v54 = vpop.xlane.xlu1 %169  ;;  %vm150_vm2 = vweird.f32 %v204_v48 }
 0x11e   :  { %205 = vrsqrt.f32 %v142_v49  ;;  %v172_v57 = vadd.f32 %v171_v53, %v170_v54  ;;  %vm151_vm4 = vmor %vm149_vm3, %vm150_vm2  ;;  %vm159_vm7 = vweird.f32 %v142_v49 }
 0x11f   :  { %v145_v52 = vmul.f32 %v204_v48, %v144_v50 }
 0x120   :  { %v180_v0 = vperm.slane %v172_v57, 0 }
 0x121   :  { %v146_v55 = vmul.f32 0.5, %v145_v52 }
 0x123   :  { %v147_v58 = vsub.f32 1.5, %v146_v55 }
 0x124   :  { %v206_v59 = vpop.eup %205 }
 0x125   :  { %v154_v61 = vmul.f32 %v206_v59, %v142_v49  ;;  %v148_v62 = vmul.f32 %v204_v48, %v147_v58  ;;  %vm160_vm6 = vweird.f32 %v206_v59 }
 0x126   :  { %vm161_vm8 = vmor %vm159_vm7, %vm160_vm6 }
 0x127   :  { %v155_v1 = vmul.f32 %v206_v59, %v154_v61  ;;  %v152_v2 = vsel %vm151_vm4, %v204_v48, %v148_v62 }
 0x128   :  { %v178_v3 = vmul.f32 %v176_v63, %v152_v2 }
 0x129   :  { %v156_v4 = vmul.f32 0.5, %v155_v1 }
 0x12a   :  { %v181_v5 = vadd.f32 %v180_v0, %v178_v3 }
 0x12b   :  { %v157_v6 = vsub.f32 1.5, %v156_v4 }
 0x12c   :  { %184 = vst.msk [vmem:[%s347_s7] sm:$0xff] %vm183_vm5, %v181_v5 }
 0x12d   :  { %v158_v9 = vmul.f32 %v206_v59, %v157_v6 }
 0x12f   :  { %v162_v11 = vsel %vm161_vm8, %v206_v59, %v158_v9 }
 0x130   :  { %v179_v12 = vmul.f32 %v177_v10, %v162_v11 }
 0x132   :  { %v182_v13 = vadd.f32 %v180_v0, %v179_v12 }
 0x134   :  { %185 = vst.msk [vmem:[%s347_s7 + $0x8] sm:$0xff] %vm183_vm5, %v182_v13 }
 0x135   :  { %190 = vsyncpa [#allocation4], 1 }
 0x136   :  { %191 = vsyncpa [#allocation6], 1 }

</bundles_post_ra>
